<compile_context>
chip_gen: v5e
topology: v5e:2x2
jax: 0.10.0
libtpu: 0.0.40
codegen_flags: <defaults>
</compile_context>

<pallas_src>
import jax
import jax.numpy as jnp
from jax.experimental import pallas as pl
from jax.experimental.pallas import tpu as pltpu


def _fused_linear_residual_kernel(v_ref, w_ref, b_ref, o_ref):
    """o = (v @ W + b) + v  for one (TM, H) row tile; W/b are grid-resident."""
    v = v_ref[...]                                                   # (TM, H)
    y = jnp.dot(v, w_ref[...], preferred_element_type=jnp.float32)  # MXU, f32 acc
    y = y + b_ref[...].astype(jnp.float32)                          # bias (1, H)
    o_ref[...] = (y + v.astype(jnp.float32)).astype(o_ref.dtype)    # residual


def _pick_row_tile(m, target):
    """Largest multiple-of-8 divisor of m that is <= target (falls back to m)."""
    t = min(target, m)
    t -= t % 8
    while t >= 8:
        if m % t == 0:
            return t
        t -= 8
    return m


def na_second_residual_add(d, W, b, *, tm=512):
    """JAX/Pallas equivalent of NaSecondResidualAdd(fn=Linear).

    d: dict with 'v', 'k', 'q' arrays of shape [B, S, H].
    Returns a new dict where:
      out['v'] = Linear(d['v']) + d['v']
      out['k'] = out['v']            (alias of the updated v)
      out['q'] = d['q']              (untouched by fn in this instantiation)
    """
    v = d["v"]
    B, S, H = v.shape
    M = B * S
    v2d = v.reshape(M, H)
    b2d = b.reshape(1, H)

    tm = _pick_row_tile(M, tm)
    grid = (M // tm,)

    isz = jnp.dtype(v.dtype).itemsize
    cost = pl.CostEstimate(
        flops=2 * M * H * H,
        transcendentals=0,
        bytes_accessed=2 * M * H * isz + H * H * isz + H * isz,
    )

    # NOTE: for real ViT sizes (H = 768 / 1024) the output last dim is a
    # multiple of 128 and stores are lane-dense; the tiny H=32 self-test shape
    # necessarily uses masked partial stores (full-H block is still legal).
    out2d = pl.pallas_call(
        _fused_linear_residual_kernel,
        out_shape=jax.ShapeDtypeStruct((M, H), v.dtype),
        grid=grid,
        in_specs=[
            pl.BlockSpec((tm, H), lambda i: (i, 0)),   # v   (pipelined row tiles)
            pl.BlockSpec((H, H), lambda i: (0, 0)),    # W   (VMEM-resident)
            pl.BlockSpec((1, H), lambda i: (0, 0)),    # b   (VMEM-resident)
        ],
        out_specs=pl.BlockSpec((tm, H), lambda i: (i, 0)),
        input_output_aliases={0: 0},                   # out reuses v2d's buffer
        cost_estimate=cost,
        compiler_params=pltpu.CompilerParams(
            dimension_semantics=("parallel",)),
    )(v2d, W, b2d)

    v_out = out2d.reshape(B, S, H)
    out = dict(d)
    out["v"] = v_out
    out["k"] = v_out          # x['k'] = x['v'] (same array / alias)
    return out


def _reference(d, W, b):
    v = d["v"]
    y = jnp.einsum("bsh,hk->bsk", v, W) + b[None, None, :]
    v_out = y + v
    out = dict(d)
    out["v"] = v_out
    out["k"] = v_out
    return out


if __name__ == "__main__":
    key = jax.random.PRNGKey(0)
    kv, kk, kq, kw, kb = jax.random.split(key, 5)

    B, S, H = 2, 8, 32
    d = {
        "v": jax.random.normal(kv, (B, S, H), dtype=jnp.float32),
        "k": jax.random.normal(kk, (B, S, H), dtype=jnp.float32),
        "q": jax.random.normal(kq, (B, S, H), dtype=jnp.float32),
    }
    # Deterministic "fn" (Linear) parameters.
    W = jax.random.normal(kw, (H, H), dtype=jnp.float32) * 0.02
    b = jax.random.normal(kb, (H,), dtype=jnp.float32) * 0.02

    # Compute the reference first (the kernel aliases/donates its v2d input).
    ref = _reference(d, W, b)
    ref = jax.tree_util.tree_map(jax.block_until_ready, ref)

    # tm=8 exercises a multi-step grid (2 row tiles) even at this tiny shape;
    # the default tm=512 is the production tile size.
    out = na_second_residual_add(d, W, b, tm=8)
    jax.block_until_ready(out["v"])

    assert jnp.allclose(out["v"], ref["v"], atol=1e-5, rtol=1e-5)
    assert jnp.allclose(out["k"], out["v"])         # k aliases updated v
    assert jnp.allclose(out["q"], d["q"])           # q passes through

    print("KERNEL_OK")
</pallas_src>

<mosaic_0001>
module attributes {stable_mosaic.version = 11 : i64} {
  func.func @_fused_linear_residual_kernel(%arg0: i32, %arg1: memref<8x32xf32, #tpu.memory_space<vmem>>, %arg2: memref<32x32xf32, #tpu.memory_space<vmem>>, %arg3: memref<1x32xf32, #tpu.memory_space<vmem>>, %arg4: memref<8x32xf32, #tpu.memory_space<vmem>>) attributes {dimension_semantics = [#tpu.dimension_semantics<parallel>], iteration_bounds = array<i64: 2>, scalar_prefetch = 0 : i64, scratch_operands = 0 : i64, tpu.core_type = #tpu.core_type<tc>, window_params = [{transform_indices = @transform_0, window_bounds = array<i64: 8, 32>}, {pipeline_mode = #tpu.pipeline_mode<synchronous>, transform_indices = @transform_1, window_bounds = array<i64: 32, 32>}, {pipeline_mode = #tpu.pipeline_mode<synchronous>, transform_indices = @transform_2, window_bounds = array<i64: 1, 32>}, {transform_indices = @transform_3, window_bounds = array<i64: 8, 32>}]} {
    %c0 = arith.constant 0 : index
    %c0_0 = arith.constant 0 : index
    %0 = vector.load %arg1[%c0, %c0_0] : memref<8x32xf32, #tpu.memory_space<vmem>>, vector<8x32xf32>
    %c0_1 = arith.constant 0 : index
    %c0_2 = arith.constant 0 : index
    %1 = vector.load %arg2[%c0_1, %c0_2] : memref<32x32xf32, #tpu.memory_space<vmem>>, vector<32x32xf32>
    %cst = arith.constant dense<0.000000e+00> : vector<8x32xf32>
    %2 = tpu.matmul %0, %1, %cst {dimension_numbers = #tpu.dot_dimension_numbers<[1], [0], [0], [1], [0, 0, 1, 1], [], []>} : vector<8x32xf32>, vector<32x32xf32>, vector<8x32xf32> -> vector<8x32xf32>
    %c0_3 = arith.constant 0 : index
    %c0_4 = arith.constant 0 : index
    %3 = vector.load %arg3[%c0_3, %c0_4] : memref<1x32xf32, #tpu.memory_space<vmem>>, vector<1x32xf32>
    %4 = vector.broadcast %3 : vector<1x32xf32> to vector<8x32xf32>
    %5 = arith.addf %2, %4 : vector<8x32xf32>
    %6 = arith.addf %5, %0 : vector<8x32xf32>
    %c0_5 = arith.constant 0 : index
    %c0_6 = arith.constant 0 : index
    %7 = vector.load %arg4[%c0_5, %c0_6] : memref<8x32xf32, #tpu.memory_space<vmem>>, vector<8x32xf32>
    tpu.vector_store %arg4[%c0_5, %c0_6], %6 {strides = array<i32>} : memref<8x32xf32, #tpu.memory_space<vmem>>, vector<8x32xf32>,
    return
  }
  func.func @transform_0(%arg0: i32) -> (i32, i32) {
    %c0_i32 = arith.constant 0 : i32
    %c0_i32_0 = arith.constant 0 : i32
    return %arg0, %c0_i32 : i32, i32
  }
  func.func @transform_1(%arg0: i32) -> (i32, i32) {
    %c0_i32 = arith.constant 0 : i32
    %c0_i32_0 = arith.constant 0 : i32
    %c0_i32_1 = arith.constant 0 : i32
    return %c0_i32, %c0_i32_0 : i32, i32
  }
  func.func @transform_2(%arg0: i32) -> (i32, i32) {
    %c0_i32 = arith.constant 0 : i32
    %c0_i32_0 = arith.constant 0 : i32
    %c0_i32_1 = arith.constant 0 : i32
    return %c0_i32, %c0_i32_0 : i32, i32
  }
  func.func @transform_3(%arg0: i32) -> (i32, i32) {
    %c0_i32 = arith.constant 0 : i32
    %c0_i32_0 = arith.constant 0 : i32
    return %arg0, %c0_i32 : i32, i32
  }
}

</mosaic_0001>

<bundles_post_ra>
// kernel: tpu_custom_call.1
= control target key start
LH: loop header
LB: loop body
LE: loop exit
PB: predicated region body
PF: predicated region fallthrough
CT: control target
= control target key end

     0   :  { %8 = vsyncpa [#allocation3], 0  ;;  %s629_s0 = inlined_call_operand.hbm [shape: f32[16,32], index: 0, kind: input, shape index: {}, may-alias: {0,3}]   ;;  %s630_s1 = inlined_call_operand.vmem [shape: f32[32,32], index: 1, kind: input, shape index: {}]   ;;  %s631_s2 = inlined_call_operand.vmem [shape: f32[1,32], index: 2, kind: input, shape index: {}]   ;;  %s632_s3 = inlined_call_operand.hbm [shape: f32[16,32], index: 3, kind: output, shape index: {}, may-alias: {0,3}]  }
   0x1   :  { %10 = vsyncpa [#allocation3 + $0x1], 0 }
   0x2   :  { %11 = vsyncpa [#allocation4], 0 }
   0x3   :  { %13 = vsyncpa [#allocation4 + $0x1], 0  ;;  %s487_s12 = smov 0   ;;  %s489_s13 = smov 0  }
   0x4   :  { %s491_s14 = smov 0   ;;  %s493_s15 = smov 0  }
   0x5 LB: > { %s508_s16 = sadd.s32 4294967295, %s465_s15   ;;  %s309_s17 = sadd.s32 4294967294, %s465_s15   ;;  %s465_s15 = sphi %s493_s15, %s642_s15   ;;  %s461_s14 = sphi %s491_s14, %s641_s14   ;;  %s457_s13 = sphi %s489_s13, %s640_s13   ;;  %s453_s12 = sphi %s487_s12, %s639_s12  }
   0x6   : > { %s512_s18 = sadd.s32 1, %s465_s15   ;;  %s26_s19 = sadd.s32 1, %s461_s14 }
   0x7   : > { %s23_s20 = ssub.s32 %s465_s15, %s512_s18  ;;  %p33_p0 = scmp.ne.s32.totalorder %s461_s14, %s457_s13 }
   0x8   : > { %p24_p1 = scmp.eq.s32.totalorder %s23_s20, 0  ;;  %p34_p2 = scmp.eq.s32.totalorder %s465_s15, 0 }
   0x9   : > { %p39_p3 = scmp.ne.s32.totalorder %s457_s13, %s453_s12  ;;  %p40_p4 = scmp.eq.s32.totalorder %s508_s16, 0 }
   0xa   : > { %s524_s21 = scalar_select %p24_p1, %s461_s14, %s26_s19  }
   0xb   : > { %p526_p5 = por %p34_p2, %p33_p0  ;;  %p530_p6 = por %p40_p4, %p39_p3 }
   0xc   : > { %p105_p7 = scmp.eq.s32.totalorder %s508_s16, 1  ;;  %p111_p8 = scmp.eq.s32.totalorder %s309_s17, 1 }
   0xd   : > { %p334_p10 = scmp.lt.s32.totalorder %s465_s15, 2  ;;  %s137_s26 = sand.u32 1, %s461_s14  }
   0xe   : > { %p537_p11 = por %p105_p7, %p33_p0  ;;  %p541_p12 = por %p111_p8, %p39_p3 }
   0xf   : > { %s313_s27 = sshll.u32 %s465_s15, 3  ;;  %s312_s28 = sshll.u32 %s137_s26, 3 }
  0x10   : > { %s145_s4 = scalar_lea.hbm %s629_s0, %s313_s27  ;;  %s141_s6 = scalar_lea.vmem [#allocation2], %s312_s28 }
  0x11   : > { %s147_s5 = sshll.u32 %s145_s4, 4  ;;  %s149_s7 = sshll.u32 %s141_s6, 4  ;;  %s148_s5 = int_to_ptr.hbm [resolvable:$true] %s147_s5  ;;  %s150_s7 = int_to_ptr.vmem [resolvable:$true] %s149_s7 }
  0x12   : > { %p552_p13 = pnand %p334_p10, %p526_p5  ;;  %p314_p0 = scmp.ge.s32.totalorder %s465_s15, 1 }
  0x13   : > { %p154_p1 = scmp.lt.s32.totalorder %s465_s15, 3  ;;  %s138_s9 = scalar_lea.sflag [#allocation3], %s137_s26 }
  0x14   : > { %s369_s10 = sshra.s32 %s148_s5, 4  ;;  %p373_p3 = pneg %p552_p13  ;;  %s370_s10 = int_to_ptr.hbm [resolvable:$true] %s369_s10 }
  0x15   : > { %s371_s11 = scalar_lea.hbm %s370_s10, 8  ;;  %s376_s20 = scalar_lea.hbm %s629_s0, 16 }
  0x16   : > { %p372_p2 = scmp.ne.s32.totalorder %s370_s10, %s371_s11  ;;  %p377_p5 = scmp.lt.s32.totalorder %s370_s10, %s629_s0 }
  0x17   : > { %p378_p8 = scmp.lt.s32.totalorder %s376_s20, %s371_s11 }
  0x18   : > { %p374_p4 = pnand %p373_p3, %p372_p2 }
  0x19   : > { %p379_p10 = por %p378_p8, %p377_p5 }
  0x1a   : > { %p375_p7 = pneg %p374_p4 }
  0x1c   : > { %p380_p9 = pnand %p379_p10, %p375_p7 }
  0x1e   : > { %383 = shalt.err (!%p380_p9)
}
  0x1f   : > { %329 = dma.hbm_to_vmem [thread:$0]  (!%p552_p13), %s148_s5, 128, %s150_s7, %s138_s9  }
  0x20   : > { %p155_p2 = pnand %p314_p0, %p154_p1 }
  0x21   : > { %s573_s26 = sand.u32 (!%p155_p2), 1, %s457_s13  }
  0x22   : > { %158 = sbr.rel (%p155_p2) target bundleno = 181 (0xb5), region = 32  ;;  %s315_s28 = sshll.u32 (!%p155_p2), %s573_s26, 3 }
  0x23   : > { %s161_s29 = scalar_lea.sflag (!%p155_p2), [#allocation3], %s573_s26  ;;  %s164_s30 = scalar_lea.vmem (!%p155_p2), [#allocation2], %s315_s28 }
  0x27   : > { %444 = dma.done.wait (%p530_p6), %s161_s29, 128  }
  0x28   : > { %446 = vsyncadd (%p530_p6), %s161_s29, 4294967168  ;;  %v192_v0 = vld [vmem:[%s630_s1 + $0x18] sm:$0xff]  ;;  %v191_v1 = vld [vmem:[%s630_s1 + $0x10] sm:$0xff]  ;;  %vm197_vm0 = vcmask 261120   ;;  %s319_s23 = sshll.u32 %s508_s16, 3  ;;  %s187_s29 = scalar_lea.vmem [#allocation5], %s315_s28 }
  0x29   : > { %213 = vmatpush.msra.mxu0 %v192_v0  ;;  %v190_v2 = vld [vmem:[%s630_s1 + $0x8] sm:$0xff]  ;;  %v189_v3 = vld [vmem:[%s630_s1] sm:$0xff]  ;;  %s234_s27 = scalar_lea.hbm %s632_s3, %s319_s23  ;;  %s236_s4 = sshll.u32 %s187_s29, 4  ;;  %s237_s4 = int_to_ptr.vmem [resolvable:$true] %s236_s4 }
  0x2a   : > { %v188_v4 = vld [vmem:[%s164_s30] sm:$0xff]  ;;  %s238_s5 = sshll.u32 %s234_s27, 4  ;;  %s224_s30 = scalar_lea.sflag [#allocation4], %s573_s26  ;;  %s239_s5 = int_to_ptr.hbm [resolvable:$true] %s238_s5 }
  0x2b   : > { %214 = vmatpush.msra.mxu0 %v191_v1  ;;  %v368_v5 = vld [vmem:[%s631_s2] ss:$0 sm:$0xff]  ;;  %s413_s16 = sshra.s32 %s239_s5, 4  ;;  %s419_s9 = scalar_lea.hbm %s632_s3, 16  ;;  %s414_s16 = int_to_ptr.hbm [resolvable:$true] %s413_s16 }
  0x2c   : > { %s415_s6 = scalar_lea.hbm %s414_s16, 8  ;;  %p420_p0 = scmp.lt.s32.totalorder %s414_s16, %s632_s3 }
  0x2d   : > { %215 = vmatpush.msra.mxu0 %v190_v2  ;;  %p416_p6 = scmp.ne.s32.totalorder %s414_s16, %s415_s6  ;;  %p421_p1 = scmp.lt.s32.totalorder %s419_s9, %s415_s6 }
  0x2f   : > { %216 = vmatpush.msra.mxu0 %v189_v3  ;;  %p417_p9 = pnand %p416_p6, %p537_p11  ;;  %p422_p3 = por %p421_p1, %p420_p0 }
  0x30   : > { %317 = vmatmul.msk.f32.vlgmr.msra.gmra.mxu0 %vm197_vm0, %v188_v4 }
  0x31   : > { %p418_p13 = pneg %p417_p9 }
  0x33   : > { %p423_p4 = pnand %p422_p3, %p418_p13 }
  0xad   : > { %v218_v6 = vpop.f32.mrf.mxu0 }
  0xae   : > { %v219_v7 = vadd.f32 %v368_v5, %v218_v6 }
  0xb0   : > { %v221_v8 = vadd.f32 %v219_v7, %v188_v4 }
  0xb2   : > { %222 = vst.msk [vmem:[%s187_s29] sm:$0xff] %vm197_vm0, %v221_v8 }
  0xb3   : > { %426 = shalt.err (!%p423_p4)
}
  0xb4   : > { %324 = dma.vmem_to_hbm [thread:$0]  (%p537_p11), %s237_s4, 128, %s239_s5, %s224_s30  }
  0xb5 PF: > { %s250_s26 = sand.u32 1, %s453_s12   ;;  %p638_p7 = scmp.ge.s32.totalorder %s465_s15, 2 }
  0xb6   : > { %s251_s11 = scalar_lea.sflag [#allocation4], %s250_s26 }
  0xb7   : > { %p331_p5 = pnand %p638_p7, %p541_p12 }
  0xb9   : > { %p332_p8 = pneg %p331_p5 }
  0xbb   : > { %448 = dma.done.wait (%p332_p8), %s251_s11, 128  }
  0xbc   : > { %450 = vsyncadd (%p332_p8), %s251_s11, 4294967168  ;;  %p16_p10 = scmp.ge.s32.totalorder %s512_s18, 4   ;;  %s639_s12 = smov %s457_s13 }
  0xbd   : > { %s640_s13 = smov %s461_s14  ;;  %s641_s14 = smov %s524_s21 }
  0xbe   : > { %s642_s15 = smov %s512_s18  ;;  %18 = sbr.rel (!%p16_p10) target bundleno = 5 (0x5), region = 77 }
  0xc3   :  { %257 = vsyncpa [#allocation3], 1 }
  0xc4   :  { %259 = vsyncpa [#allocation3 + $0x1], 1 }
  0xc5   :  { %260 = vsyncpa [#allocation4], 1 }
  0xc6   :  { %262 = vsyncpa [#allocation4 + $0x1], 1 }

</bundles_post_ra>
